<compile_context>
chip_gen: v6e
topology: v6e:2x2x1
jax: 0.10.0
libtpu: 0.0.40
codegen_flags: <defaults>
</compile_context>

<pallas_src>
import jax
import jax.numpy as jnp
from jax import lax
from jax.experimental import pallas as pl
from jax.experimental.pallas import tpu as pltpu


_VMEM_LIMIT_BYTES = 32 * 1024 * 1024  # explicit scoped-VMEM budget (fits v5e/v6e/v7x)


def _round_up(x, m):
    return ((x + m - 1) // m) * m


# ----------------------------- kernel bodies ---------------------------------
def _node_to_edge_kernel(h_ref, x_ref, w_ref, binv_ref, e_ref, acc_ref):
    """E = B^{-1} H^T (X @ Theta).  grid = (edge_tiles [parallel], node_tiles [arbitrary])."""
    @pl.when(pl.program_id(1) == 0)
    def _():
        acc_ref[...] = jnp.zeros_like(acc_ref)

    # Project this node tile: (TN, Cin) @ (Cin, HD) -> (TN, HD), f32 accumulate.
    y = jnp.dot(x_ref[...], w_ref[...], preferred_element_type=jnp.float32)
    # H^T @ Y without shipping a transposed copy of H: contract node dims (0, 0).
    acc_ref[...] += lax.dot_general(
        h_ref[...], y.astype(h_ref.dtype),
        dimension_numbers=(((0,), (0,)), ((), ())),
        preferred_element_type=jnp.float32)

    @pl.when(pl.program_id(1) == pl.num_programs(1) - 1)
    def _():
        # B^{-1} scaling in f32, store bf16 for the next MXU pass.
        e_ref[...] = (binv_ref[...] * acc_ref[...]).astype(e_ref.dtype)


def _edge_to_node_kernel(h_ref, e_ref, dinv_ref, bias_ref, o_ref, acc_ref):
    """X' = relu(D^{-1} H E + bias).  grid = (node_tiles [parallel], edge_tiles [arbitrary])."""
    @pl.when(pl.program_id(1) == 0)
    def _():
        acc_ref[...] = jnp.zeros_like(acc_ref)

    acc_ref[...] += jnp.dot(h_ref[...], e_ref[...], preferred_element_type=jnp.float32)

    @pl.when(pl.program_id(1) == pl.num_programs(1) - 1)
    def _():
        out = jnp.maximum(dinv_ref[...] * acc_ref[...] + bias_ref[...], 0.0)
        o_ref[...] = out.astype(o_ref.dtype)   # dropout is identity in eval mode


def _head_kernel(p_ref, x_ref, wfc_ref, bfc_ref, o_ref, acc_ref):
    """out = P @ (X2 @ Wfc) + bfc (reassociated).  grid = (node_tiles [arbitrary])."""
    @pl.when(pl.program_id(0) == 0)
    def _():
        acc_ref[...] = jnp.zeros_like(acc_ref)

    z = jnp.dot(x_ref[...], wfc_ref[...], preferred_element_type=jnp.float32)
    acc_ref[...] += jnp.dot(p_ref[...], z.astype(p_ref.dtype),
                            preferred_element_type=jnp.float32)

    @pl.when(pl.program_id(0) == pl.num_programs(0) - 1)
    def _():
        o_ref[...] = acc_ref[...] + bfc_ref[...]


# ----------------------------- pallas_call wrappers ---------------------------
def _node_to_edge(h, x, w, binv, *, tn, tm, hd):
    n_pad, m_pad = h.shape
    cin = x.shape[1]
    flops = 2 * n_pad * cin * hd + 2 * n_pad * m_pad * hd
    bytes_accessed = (h.size * 2 + x.size * 2 + w.size * 2
                      + binv.size * 4 + m_pad * hd * 2)
    return pl.pallas_call(
        _node_to_edge_kernel,
        out_shape=jax.ShapeDtypeStruct((m_pad, hd), jnp.bfloat16),
        grid=(m_pad // tm, n_pad // tn),
        in_specs=[
            pl.BlockSpec((tn, tm), lambda j, i: (i, j)),
            pl.BlockSpec((tn, cin), lambda j, i: (i, 0)),
            pl.BlockSpec((cin, hd), lambda j, i: (0, 0)),
            pl.BlockSpec((tm, 1), lambda j, i: (j, 0)),
        ],
        out_specs=pl.BlockSpec((tm, hd), lambda j, i: (j, 0)),
        scratch_shapes=[pltpu.VMEM((tm, hd), jnp.float32)],
        compiler_params=pltpu.CompilerParams(
            dimension_semantics=("parallel", "arbitrary"),
            vmem_limit_bytes=_VMEM_LIMIT_BYTES),
        cost_estimate=pl.CostEstimate(flops=int(flops), transcendentals=0,
                                      bytes_accessed=int(bytes_accessed)),
    )(h, x, w, binv)


def _edge_to_node(h, e, dinv, bias, *, tn, tm, hd):
    n_pad, m_pad = h.shape
    flops = 2 * n_pad * m_pad * hd
    bytes_accessed = (h.size * 2 + e.size * 2 + dinv.size * 4
                      + bias.size * 4 + n_pad * hd * 2)
    return pl.pallas_call(
        _edge_to_node_kernel,
        out_shape=jax.ShapeDtypeStruct((n_pad, hd), jnp.bfloat16),
        grid=(n_pad // tn, m_pad // tm),
        in_specs=[
            pl.BlockSpec((tn, tm), lambda i, j: (i, j)),
            pl.BlockSpec((tm, hd), lambda i, j: (j, 0)),
            pl.BlockSpec((tn, 1), lambda i, j: (i, 0)),
            pl.BlockSpec((1, hd), lambda i, j: (0, 0)),
        ],
        out_specs=pl.BlockSpec((tn, hd), lambda i, j: (i, 0)),
        scratch_shapes=[pltpu.VMEM((tn, hd), jnp.float32)],
        compiler_params=pltpu.CompilerParams(
            dimension_semantics=("parallel", "arbitrary"),
            vmem_limit_bytes=_VMEM_LIMIT_BYTES),
        cost_estimate=pl.CostEstimate(flops=int(flops), transcendentals=0,
                                      bytes_accessed=int(bytes_accessed)),
    )(h, e, dinv, bias)


def _head(p, x2, wfc, bfc, *, tn, hd, outp, g):
    n_pad = x2.shape[0]
    flops = 2 * n_pad * hd * outp + 2 * g * n_pad * outp
    bytes_accessed = (p.size * 2 + x2.size * 2 + wfc.size * 2
                      + bfc.size * 4 + g * outp * 4)
    return pl.pallas_call(
        _head_kernel,
        out_shape=jax.ShapeDtypeStruct((g, outp), jnp.float32),
        grid=(n_pad // tn,),
        in_specs=[
            pl.BlockSpec((g, tn), lambda i: (0, i)),
            pl.BlockSpec((tn, hd), lambda i: (i, 0)),
            pl.BlockSpec((hd, outp), lambda i: (0, 0)),
            pl.BlockSpec((1, outp), lambda i: (0, 0)),
        ],
        out_specs=pl.BlockSpec((g, outp), lambda i: (0, 0)),
        scratch_shapes=[pltpu.VMEM((g, outp), jnp.float32)],
        compiler_params=pltpu.CompilerParams(
            dimension_semantics=("arbitrary",),
            vmem_limit_bytes=_VMEM_LIMIT_BYTES),
        cost_estimate=pl.CostEstimate(flops=int(flops), transcendentals=0,
                                      bytes_accessed=int(bytes_accessed)),
    )(p, x2, wfc, bfc)


# ------------------------------ JAX forward -----------------------------------
def hypergraph_net_forward(x, edge_index, batch, params, num_hyperedges, num_graphs,
                           *, tile_n=128, tile_m=128):
    n, _ = x.shape
    m = num_hyperedges
    g = num_graphs
    w1, b1, w2, b2, wfc, bfc = params
    hid = w1.shape[1]
    out_ch = wfc.shape[1]

    # Padded sizes: channels to 128 lanes, nodes/hyperedges to tile multiples.
    hd = max(_round_up(hid, 128), 128)
    outp = max(_round_up(out_ch, 128), 128)
    n_pad = _round_up(n, tile_n)
    m_pad = _round_up(m, tile_m)

    node_idx, hedge_idx = edge_index[0], edge_index[1]

    # Dense multiplicity incidence (scatter-ADD matches PyG degree/message
    # semantics when edge_index has duplicate (node, hyperedge) pairs).
    h = jnp.zeros((n, m), jnp.float32).at[node_idx, hedge_idx].add(1.0)
    deg_n = jnp.sum(h, axis=1, keepdims=True)                 # (N, 1)
    deg_e = jnp.sum(h, axis=0)[:, None]                        # (M, 1)
    dinv = jnp.where(deg_n > 0, 1.0 / deg_n, 0.0)
    binv = jnp.where(deg_e > 0, 1.0 / deg_e, 0.0)

    # Mean pooling matrix P (G, N).
    onehot = (batch[None, :] == jnp.arange(g)[:, None]).astype(jnp.float32)
    counts = jnp.sum(onehot, axis=1, keepdims=True)
    p = onehot / jnp.where(counts > 0, counts, 1.0)

    # Pad & cast: bf16 MXU operands, f32 scaling vectors / biases.
    bf16 = jnp.bfloat16
    h_b = jnp.pad(h, ((0, n_pad - n), (0, m_pad - m))).astype(bf16)
    x_b = jnp.pad(x, ((0, n_pad - n), (0, 0))).astype(bf16)
    p_b = jnp.pad(p, ((0, 0), (0, n_pad - n))).astype(bf16)
    dinv_p = jnp.pad(dinv, ((0, n_pad - n), (0, 0))).astype(jnp.float32)
    binv_p = jnp.pad(binv, ((0, m_pad - m), (0, 0))).astype(jnp.float32)

    w1_b = jnp.pad(w1, ((0, 0), (0, hd - hid))).astype(bf16)
    b1_p = jnp.pad(b1, (0, hd - hid))[None, :].astype(jnp.float32)
    w2_b = jnp.pad(w2, ((0, hd - hid), (0, hd - hid))).astype(bf16)
    b2_p = jnp.pad(b2, (0, hd - hid))[None, :].astype(jnp.float32)
    wfc_b = jnp.pad(wfc, ((0, hd - hid), (0, outp - out_ch))).astype(bf16)
    bfc_p = jnp.pad(bfc, (0, outp - out_ch))[None, :].astype(jnp.float32)

    # conv1 -> relu -> dropout(identity)
    e1 = _node_to_edge(h_b, x_b, w1_b, binv_p, tn=tile_n, tm=tile_m, hd=hd)
    x1 = _edge_to_node(h_b, e1, dinv_p, b1_p, tn=tile_n, tm=tile_m, hd=hd)
    # conv2 -> relu -> dropout(identity)
    e2 = _node_to_edge(h_b, x1, w2_b, binv_p, tn=tile_n, tm=tile_m, hd=hd)
    x2 = _edge_to_node(h_b, e2, dinv_p, b2_p, tn=tile_n, tm=tile_m, hd=hd)
    # global mean pool + fc head (reassociated)
    out = _head(p_b, x2, wfc_b, bfc_p, tn=tile_n, hd=hd, outp=outp, g=g)
    return out[:, :out_ch].reshape(-1)  # .view(-1)


# Pure-JAX f32 reference of the same math (for a sanity check in main).
def _reference_forward(x, edge_index, batch, params, m, g):
    w1, b1, w2, b2, wfc, bfc = params
    n = x.shape[0]
    h = jnp.zeros((n, m), jnp.float32).at[edge_index[0], edge_index[1]].add(1.0)
    deg_n = jnp.sum(h, axis=1, keepdims=True)
    deg_e = jnp.sum(h, axis=0)[:, None]
    dinv = jnp.where(deg_n > 0, 1.0 / deg_n, 0.0)
    binv = jnp.where(deg_e > 0, 1.0 / deg_e, 0.0)
    onehot = (batch[None, :] == jnp.arange(g)[:, None]).astype(jnp.float32)
    counts = jnp.sum(onehot, axis=1, keepdims=True)
    p = onehot / jnp.where(counts > 0, counts, 1.0)

    def conv(feat, w, b):
        y = feat @ w
        e = binv * (h.T @ y)
        return dinv * (h @ e) + b

    x1 = jnp.maximum(conv(x, w1, b1), 0.0)
    x2 = jnp.maximum(conv(x1, w2, b2), 0.0)
    return ((p @ x2) @ wfc + bfc).reshape(-1)


# --------------------------------- main ----------------------------------------
if __name__ == "__main__":
    N = 16           # total nodes across the batch
    IN_CH = 4        # in_channels
    HID = 32         # hidden_channels
    OUT_CH = 1       # out_channels
    M = 8            # number of hyperedges
    G = 2            # number of graphs in the batch

    key = jax.random.PRNGKey(0)
    k = jax.random.split(key, 8)

    x = jax.random.normal(k[0], (N, IN_CH), jnp.float32)

    nodes_per_edge = 3
    node_idx = jax.random.randint(k[1], (M * nodes_per_edge,), 0, N, jnp.int32)
    hedge_idx = jnp.repeat(jnp.arange(M, dtype=jnp.int32), nodes_per_edge)
    edge_index = jnp.stack([node_idx, hedge_idx], axis=0)

    batch = jnp.concatenate(
        [jnp.zeros((N // 2,), jnp.int32), jnp.ones((N - N // 2,), jnp.int32)]
    )

    w1 = 0.1 * jax.random.normal(k[2], (IN_CH, HID), jnp.float32)
    b1 = jnp.zeros((HID,), jnp.float32)
    w2 = 0.1 * jax.random.normal(k[3], (HID, HID), jnp.float32)
    b2 = jnp.zeros((HID,), jnp.float32)
    wfc = 0.1 * jax.random.normal(k[4], (HID, OUT_CH), jnp.float32)
    bfc = 0.1 * jax.random.normal(k[5], (OUT_CH,), jnp.float32)
    params = (w1, b1, w2, b2, wfc, bfc)

    out = hypergraph_net_forward(x, edge_index, batch, params, M, G)
    out = jax.block_until_ready(out)
    assert out.shape == (G * OUT_CH,)

    ref = _reference_forward(x, edge_index, batch, params, M, G)
    assert jnp.allclose(out, ref, atol=5e-2, rtol=5e-2), (out, ref)

    print("KERNEL_OK")
</pallas_src>

<mosaic_0001>
module attributes {stable_mosaic.version = 11 : i64} {
  func.func @_node_to_edge_kernel(%arg0: i32, %arg1: i32, %arg2: memref<128x128xbf16, #tpu.memory_space<vmem>>, %arg3: memref<128x4xbf16, #tpu.memory_space<vmem>>, %arg4: memref<4x128xbf16, #tpu.memory_space<vmem>>, %arg5: memref<128x1xf32, #tpu.memory_space<vmem>>, %arg6: memref<128x128xbf16, #tpu.memory_space<vmem>>, %arg7: memref<128x128xf32, #tpu.memory_space<vmem>>) attributes {dimension_semantics = [#tpu.dimension_semantics<parallel>, #tpu.dimension_semantics<arbitrary>], iteration_bounds = array<i64: 1, 1>, scalar_prefetch = 0 : i64, scratch_operands = 1 : i64, tpu.core_type = #tpu.core_type<tc>, window_params = [{transform_indices = @transform_0, window_bounds = array<i64: 128, 128>}, {transform_indices = @transform_1, window_bounds = array<i64: 128, 4>}, {pipeline_mode = #tpu.pipeline_mode<synchronous>, transform_indices = @transform_2, window_bounds = array<i64: 4, 128>}, {transform_indices = @transform_3, window_bounds = array<i64: 128, 1>}, {transform_indices = @transform_4, window_bounds = array<i64: 128, 128>}]} {
    %c0_i32 = arith.constant 0 : i32
    %0 = arith.cmpi eq, %arg1, %c0_i32 : i32
    %1 = arith.extui %0 : i1 to i32
    %c0_i32_0 = arith.constant 0 : i32
    %2 = arith.cmpi ne, %1, %c0_i32_0 : i32
    scf.if %2 {
      %cst_13 = arith.constant 0.000000e+00 : f32
      %15 = vector.broadcast %cst_13 : f32 to vector<128x128xf32>
      %c0_14 = arith.constant 0 : index
      %c0_15 = arith.constant 0 : index
      %16 = vector.load %arg7[%c0_14, %c0_15] : memref<128x128xf32, #tpu.memory_space<vmem>>, vector<128x128xf32>
      tpu.vector_store %arg7[%c0_14, %c0_15], %15 {strides = array<i32>} : memref<128x128xf32, #tpu.memory_space<vmem>>, vector<128x128xf32>,
    } else {
    }
    %c0 = arith.constant 0 : index
    %c0_1 = arith.constant 0 : index
    %3 = vector.load %arg3[%c0, %c0_1] : memref<128x4xbf16, #tpu.memory_space<vmem>>, vector<128x4xbf16>
    %c0_2 = arith.constant 0 : index
    %c0_3 = arith.constant 0 : index
    %4 = vector.load %arg4[%c0_2, %c0_3] : memref<4x128xbf16, #tpu.memory_space<vmem>>, vector<4x128xbf16>
    %cst = arith.constant dense<0.000000e+00> : vector<128x128xf32>
    %5 = tpu.matmul %3, %4, %cst {dimension_numbers = #tpu.dot_dimension_numbers<[1], [0], [0], [1], [0, 0, 1, 1], [], []>} : vector<128x4xbf16>, vector<4x128xbf16>, vector<128x128xf32> -> vector<128x128xf32>
    %c0_4 = arith.constant 0 : index
    %c0_5 = arith.constant 0 : index
    %6 = vector.load %arg7[%c0_4, %c0_5] : memref<128x128xf32, #tpu.memory_space<vmem>>, vector<128x128xf32>
    %c0_6 = arith.constant 0 : index
    %c0_7 = arith.constant 0 : index
    %7 = vector.load %arg2[%c0_6, %c0_7] : memref<128x128xbf16, #tpu.memory_space<vmem>>, vector<128x128xbf16>
    %8 = arith.truncf %5 : vector<128x128xf32> to vector<128x128xbf16>
    %cst_8 = arith.constant dense<0.000000e+00> : vector<128x128xf32>
    %9 = tpu.matmul %7, %8, %cst_8 {dimension_numbers = #tpu.dot_dimension_numbers<[0], [0], [1], [1], [0, 1, 1, 1], [], []>} : vector<128x128xbf16>, vector<128x128xbf16>, vector<128x128xf32> -> vector<128x128xf32>
    %10 = arith.addf %6, %9 : vector<128x128xf32>
    %c0_9 = arith.constant 0 : index
    %c0_10 = arith.constant 0 : index
    %11 = vector.load %arg7[%c0_9, %c0_10] : memref<128x128xf32, #tpu.memory_space<vmem>>, vector<128x128xf32>
    tpu.vector_store %arg7[%c0_9, %c0_10], %10 {strides = array<i32>} : memref<128x128xf32, #tpu.memory_space<vmem>>, vector<128x128xf32>,
    %c0_i32_11 = arith.constant 0 : i32
    %12 = arith.cmpi eq, %arg1, %c0_i32_11 : i32
    %13 = arith.extui %12 : i1 to i32
    %c0_i32_12 = arith.constant 0 : i32
    %14 = arith.cmpi ne, %13, %c0_i32_12 : i32
    scf.if %14 {
      %c0_13 = arith.constant 0 : index
      %c0_14 = arith.constant 0 : index
      %15 = vector.load %arg5[%c0_13, %c0_14] : memref<128x1xf32, #tpu.memory_space<vmem>>, vector<128x1xf32>
      %c0_15 = arith.constant 0 : index
      %c0_16 = arith.constant 0 : index
      %16 = vector.load %arg7[%c0_15, %c0_16] : memref<128x128xf32, #tpu.memory_space<vmem>>, vector<128x128xf32>
      %17 = vector.broadcast %15 : vector<128x1xf32> to vector<128x128xf32>
      %18 = arith.mulf %17, %16 : vector<128x128xf32>
      %19 = arith.truncf %18 : vector<128x128xf32> to vector<128x128xbf16>
      %c0_17 = arith.constant 0 : index
      %c0_18 = arith.constant 0 : index
      %20 = vector.load %arg6[%c0_17, %c0_18] : memref<128x128xbf16, #tpu.memory_space<vmem>>, vector<128x128xbf16>
      tpu.vector_store %arg6[%c0_17, %c0_18], %19 {strides = array<i32>} : memref<128x128xbf16, #tpu.memory_space<vmem>>, vector<128x128xbf16>,
    } else {
    }
    return
  }
  func.func @transform_0(%arg0: i32, %arg1: i32) -> (i32, i32) {
    %c0_i32 = arith.constant 0 : i32
    return %arg1, %arg0 : i32, i32
  }
  func.func @transform_1(%arg0: i32, %arg1: i32) -> (i32, i32) {
    %c0_i32 = arith.constant 0 : i32
    %c0_i32_0 = arith.constant 0 : i32
    return %arg1, %c0_i32 : i32, i32
  }
  func.func @transform_2(%arg0: i32, %arg1: i32) -> (i32, i32) {
    %c0_i32 = arith.constant 0 : i32
    %c0_i32_0 = arith.constant 0 : i32
    %c0_i32_1 = arith.constant 0 : i32
    return %c0_i32, %c0_i32_0 : i32, i32
  }
  func.func @transform_3(%arg0: i32, %arg1: i32) -> (i32, i32) {
    %c0_i32 = arith.constant 0 : i32
    %c0_i32_0 = arith.constant 0 : i32
    return %arg0, %c0_i32 : i32, i32
  }
  func.func @transform_4(%arg0: i32, %arg1: i32) -> (i32, i32) {
    %c0_i32 = arith.constant 0 : i32
    %c0_i32_0 = arith.constant 0 : i32
    return %arg0, %c0_i32 : i32, i32
  }
}

</mosaic_0001>

<bundles_post_ra>
// kernel: tpu_custom_call.1
= control target key start
LH: loop header
LB: loop body
LE: loop exit
PB: predicated region body
PF: predicated region fallthrough
CT: control target
= control target key end

     0   :  { %vm121_vm0 = vcmask 1041408   ;;  %vm96_vm1 = vcmask 31744   ;;  %s1063_s0 = inlined_call_operand.vmem [shape: bf16[128,128], index: 0, kind: input, shape index: {}]   ;;  %s1064_s1 = inlined_call_operand.vmem [shape: bf16[128,4], index: 1, kind: input, shape index: {}]   ;;  %s1065_s2 = inlined_call_operand.vmem [shape: bf16[4,128], index: 2, kind: input, shape index: {}]   ;;  %s1066_s3 = inlined_call_operand.vmem [shape: f32[128,1], index: 3, kind: input, shape index: {}]   ;;  %s1067_s4 = inlined_call_operand.hbm [shape: bf16[128,128], index: 4, kind: output, shape index: {}]  }
   0x1   :  { %v55_v0 = vld [vmem:[%s1065_s2] sm:$0x3]  ;;  %v884_v3 = vld [vmem:[%s1064_s1 + $0x8] sm:$0xff]   ;;  %v885_v4 = vld [vmem:[%s1064_s1 + $0x10] sm:$0xff]  }
   0x2   :  { %v883_v1 = vld [vmem:[%s1064_s1] sm:$0xff]   ;;  %876 = vmatprep.subr.msk.bf16.mxu0 %vm121_vm0, %v55_v0  ;;  %v123_v2 = vsel %vm121_vm0, %v55_v0, 0  ;;  %v886_v5 = vld [vmem:[%s1064_s1 + $0x18] sm:$0xff]   ;;  %v892_v8 = vld [vmem:[%s1063_s0 + $0x8] sm:$0xff]  }
   0x3   :  { %811 = vmatpush3.bf16.msra.mxu0 %v123_v2  ;;  %812 = vmatprep.mubr.msk.bf16.mxu0 %vm96_vm1, %v883_v1  ;;  %v891_v6 = vld [vmem:[%s1063_s0] sm:$0xff]   ;;  %v893_v9 = vld [vmem:[%s1063_s0 + $0x10] sm:$0xff]  }
   0x4   :  { %v887_v7 = vld [vmem:[%s1064_s1 + $0x20] sm:$0xff]   ;;  %310 = vxpose.xlu0.c.b16.start [1/8] %v891_v6, 128 }
   0x6   :  { %813 = vmatmul.mubr.msk.bf16.vlgmr.msra.gmra.mxu0 %vm96_vm1, %v884_v3 }
   0x7   :  { %816 = vmatprep.mubr.msk.bf16.mxu0 %vm96_vm1, %v885_v4 }
   0x8   :  { %311 = vxpose.xlu0.c.b16.cont [2/8] %v892_v8, 128 }
   0xe   :  { %817 = vmatmul.mubr.msk.bf16.gmra.mxu0 %vm96_vm1, %v886_v5 }
   0xf   :  { %820 = vmatprep.mubr.msk.bf16.mxu0 %vm96_vm1, %v887_v7 }
  0x10   :  { %9 = vsyncpa [#allocation4], 0  ;;  %v888_v10 = vld [vmem:[%s1064_s1 + $0x28] sm:$0xff]   ;;  %v889_v11 = vld [vmem:[%s1064_s1 + $0x30] sm:$0xff]   ;;  %312 = vxpose.xlu0.c.b16.cont [3/8] %v893_v9, 128  ;;  %v921_v20 = vmov 0  }
  0x11   :  { %v894_v12 = vld [vmem:[%s1063_s0 + $0x18] sm:$0xff]   ;;  %v895_v13 = vld [vmem:[%s1063_s0 + $0x20] sm:$0xff]   ;;  %v896_v15 = vld [vmem:[%s1063_s0 + $0x28] sm:$0xff]   ;;  %881 = vset.pattern.permute.xlu1 %v921_v20 }
  0x12   :  { %v890_v14 = vld [vmem:[%s1064_s1 + $0x38] sm:$0xff]   ;;  %v897_v16 = vld [vmem:[%s1063_s0 + $0x30] sm:$0xff]   ;;  %v458_v21 = vld [vmem:[%s1066_s3] sm:$0xff] }
  0x13   :  { %v898_v17 = vld [vmem:[%s1063_s0 + $0x38] sm:$0xff]   ;;  %492 = vperm.xlu1 %881, %v458_v21   ;;  %v459_v23 = vld [vmem:[%s1066_s3 + $0x8] sm:$0xff]  ;;  %v460_v24 = vld [vmem:[%s1066_s3 + $0x10] sm:$0xff] }
  0x14   :  { %313 = vxpose.xlu0.c.b16.cont [4/8] %v894_v12, 128  ;;  %v461_v25 = vld [vmem:[%s1066_s3 + $0x18] sm:$0xff]  ;;  %v462_v26 = vld [vmem:[%s1066_s3 + $0x20] sm:$0xff]  ;;  %v463_v27 = vld [vmem:[%s1066_s3 + $0x28] sm:$0xff] }
  0x15   :  { %v464_v28 = vld [vmem:[%s1066_s3 + $0x30] sm:$0xff]  ;;  %v466_v29 = vld [vmem:[%s1066_s3 + $0x40] sm:$0xff]  ;;  %v465_v30 = vld [vmem:[%s1066_s3 + $0x38] sm:$0xff] }
  0x16   :  { %821 = vmatmul.mubr.msk.bf16.gmra.mxu0 %vm96_vm1, %v888_v10  ;;  %v470_v31 = vld [vmem:[%s1066_s3 + $0x60] sm:$0xff]  ;;  %v467_v32 = vld [vmem:[%s1066_s3 + $0x48] sm:$0xff]  ;;  %v472_v33 = vld [vmem:[%s1066_s3 + $0x70] sm:$0xff] }
  0x17   :  { %824 = vmatprep.mubr.msk.bf16.mxu0 %vm96_vm1, %v889_v11  ;;  %497 = vperm.xlu1 %881, %v459_v23   ;;  %v468_v34 = vld [vmem:[%s1066_s3 + $0x50] sm:$0xff]  ;;  %v469_v35 = vld [vmem:[%s1066_s3 + $0x58] sm:$0xff]  ;;  %v471_v36 = vld [vmem:[%s1066_s3 + $0x68] sm:$0xff] }
  0x18   :  { %314 = vxpose.xlu0.c.b16.cont [5/8] %v895_v13, 128  ;;  %v473_v37 = vld [vmem:[%s1066_s3 + $0x78] sm:$0xff]  ;;  %s922_s3 = smov [#allocation3]  }
  0x19   :  { %s671_s23 = sshll.u32 %s922_s3, 4  ;;  %s672_s23 = int_to_ptr.vmem [resolvable:$true] %s671_s23 }
  0x1a   :  { %s899_s0 = scalar_lea.vmem %s672_s23, 1024  ;;  %p904_p1 = scmp.lt.s32.totalorder %s672_s23, %s672_s23 }
  0x1b   :  { %502 = vperm.xlu1 %881, %v460_v24   ;;  %p900_p0 = scmp.ne.s32.totalorder %s672_s23, %s899_s0  ;;  %p905_p2 = scmp.lt.s32.totalorder %s899_s0, %s899_s0 }
  0x1c   :  { %315 = vxpose.xlu0.c.b16.cont [6/8] %v896_v15, 128 }
  0x1d   :  { %p906_p3 = por %p905_p2, %p904_p1 }
  0x1e   :  { %825 = vmatmul.mubr.msk.bf16.gmra.mxu0 %vm96_vm1, %v890_v14 }
  0x1f   :  { %507 = vperm.xlu1 %881, %v461_v25   ;;  %p907_p4 = pnand %p906_p3, %p900_p0 }
  0x20   :  { %316 = vxpose.xlu0.c.b16.cont [7/8] %v897_v16, 128 }
  0x23   :  { %512 = vperm.xlu1 %881, %v462_v26  }
  0x24   :  { %317 = vxpose.xlu0.c.b16.end [8/8] %v898_v17, 128 }
  0x27   :  { %517 = vperm.xlu1 %881, %v463_v27  }
  0x2b   :  { %522 = vperm.xlu1 %881, %v464_v28  }
  0x2d   :  { %882 = vset.pattern.permute.xlu0 %v921_v20 }
  0x2e   :  { %532 = vperm.xlu0 %882, %v466_v29  }
  0x2f   :  { %527 = vperm.xlu1 %881, %v465_v30  }
  0x32   :  { %552 = vperm.xlu0 %882, %v470_v31  }
  0x33   :  { %537 = vperm.xlu1 %881, %v467_v32  }
  0x36   :  { %562 = vperm.xlu0 %882, %v472_v33  }
  0x37   :  { %542 = vperm.xlu1 %881, %v468_v34  }
  0x3b   :  { %547 = vperm.xlu1 %881, %v469_v35  }
  0x3f   :  { %557 = vperm.xlu1 %881, %v471_v36  }
  0x43   :  { %567 = vperm.xlu1 %881, %v473_v37  }
  0x6a   :  { %v318_v18 = vpop.trf.xlu0 }
  0x6b   :  { %844 = vmatprep.mubr.bf16.mxu0 %v318_v18 }
  0x6e   :  { %v1009_v19 = vpop.trf.xlu0 }
  0x72   :  { %v320_v22 = vpop.trf.xlu0 }
  0x73   :  { %848 = vmatprep.mubr.bf16.mxu1 %v320_v22 }
  0x76   :  { %v321_v61 = vpop.trf.xlu0 }
  0x7a   :  { %v322_v63 = vpop.trf.xlu0 }
  0x7e   :  { %v323_v0 = vpop.trf.xlu0 }
  0x82   :  { %v324_v1 = vpop.trf.xlu0 }
  0x86   :  { %v325_v2 = vpop.trf.xlu0 }
  0x8e   :  { %v493_v3 = vpop.permute.xlu1 %492 }
  0x92   :  { %v498_v4 = vpop.permute.xlu1 %497 }
  0x96   :  { %v503_v5 = vpop.permute.xlu1 %502 }
  0x9a   :  { %v508_v6 = vpop.permute.xlu1 %507 }
  0x9e   :  { %v513_v7 = vpop.permute.xlu1 %512 }
  0xa2   :  { %v518_v8 = vpop.permute.xlu1 %517 }
  0xa6   :  { %v523_v9 = vpop.permute.xlu1 %522 }
  0xa9   :  { %v533_v32 = vpop.permute.xlu0 %532 }
  0xaa   :  { %v528_v10 = vpop.permute.xlu1 %527 }
  0xae   :  { %v538_v11 = vpop.permute.xlu1 %537 }
  0xb2   :  { %v543_v14 = vpop.permute.xlu1 %542 }
  0xb6   :  { %v548_v27 = vpop.permute.xlu1 %547 }
  0xc6   :  { %v814_v38 = vpop.f32.mrf.mxu0 }
  0xc8   :  { %v159_v39 = vpop.f32.mrf.mxu0 }
  0xca   :  { %v815_v40 = vpop.f32.mrf.mxu0 }
  0xcb   :  { %v255_v60 = vpack.c.bf16 %v815_v40, %v814_v38  ;;  %v558_v38 = vpop.permute.xlu1 %557 }
  0xcc   :  { %v162_v41 = vpop.f32.mrf.mxu0 }
  0xcd   :  { %v254_v62 = vpack.c.bf16 %v162_v41, %v159_v39  ;;  %v553_v41 = vpop.permute.xlu0 %552 }
  0xce   :  { %v818_v42 = vpop.f32.mrf.mxu0 }
  0xd0   :  { %v175_v43 = vpop.f32.mrf.mxu0 }
  0xd2   :  { %v819_v44 = vpop.f32.mrf.mxu0 }
  0xd3   :  { %v257_v58 = vpack.c.bf16 %v819_v44, %v818_v42 }
  0xd4   :  { %v178_v45 = vpop.f32.mrf.mxu0 }
  0xd5   :  { %v256_v59 = vpack.c.bf16 %v178_v45, %v175_v43 }
  0xd6   :  { %v822_v46 = vpop.f32.mrf.mxu0 }
  0xd8   :  { %v191_v47 = vpop.f32.mrf.mxu0 }
  0xda   :  { %v823_v48 = vpop.f32.mrf.mxu0 }
  0xdb   :  { %v259_v56 = vpack.c.bf16 %v823_v48, %v822_v46 }
  0xdc   :  { %v194_v49 = vpop.f32.mrf.mxu0 }
  0xdd   :  { %v258_v57 = vpack.c.bf16 %v194_v49, %v191_v47  ;;  %v568_v49 = vpop.permute.xlu1 %567 }
  0xde   :  { %v826_v50 = vpop.f32.mrf.mxu0 }
  0xe0   :  { %v207_v51 = vpop.f32.mrf.mxu0 }
  0xe2   :  { %v827_v52 = vpop.f32.mrf.mxu0 }
  0xe3   :  { %v261_v53 = vpack.c.bf16 %v827_v52, %v826_v50  ;;  %v563_v50 = vpop.permute.xlu0 %562 }
  0xe4   :  { %v210_v54 = vpop.f32.mrf.mxu0 }
  0xe5   :  { %v260_v55 = vpack.c.bf16 %v210_v54, %v207_v51  ;;  %828 = vmatprep.subr.bf16.mxu0 %v261_v53  ;;  %860 = vmatprep.subr.bf16.mxu1 %v261_v53 }
  0xe6   :  { %829 = vmatpush3.bf16.msra.mxu0 %v261_v53  ;;  %868 = vmatpush3.bf16.msra.mxu1 %v261_v53 }
  0xe7   :  { %830 = vmatprep.subr.bf16.mxu0 %v260_v55  ;;  %861 = vmatprep.subr.bf16.mxu1 %v260_v55 }
  0xea   :  { %831 = vmatpush3.bf16.msra.mxu0 %v260_v55  ;;  %869 = vmatpush3.bf16.msra.mxu1 %v260_v55 }
  0xeb   :  { %832 = vmatprep.subr.bf16.mxu0 %v259_v56  ;;  %862 = vmatprep.subr.bf16.mxu1 %v259_v56 }
  0xee   :  { %833 = vmatpush3.bf16.msra.mxu0 %v259_v56  ;;  %870 = vmatpush3.bf16.msra.mxu1 %v259_v56 }
  0xef   :  { %834 = vmatprep.subr.bf16.mxu0 %v258_v57  ;;  %863 = vmatprep.subr.bf16.mxu1 %v258_v57 }
  0xf2   :  { %835 = vmatpush3.bf16.msra.mxu0 %v258_v57  ;;  %871 = vmatpush3.bf16.msra.mxu1 %v258_v57 }
  0xf3   :  { %836 = vmatprep.subr.bf16.mxu0 %v257_v58  ;;  %864 = vmatprep.subr.bf16.mxu1 %v257_v58 }
  0xf6   :  { %837 = vmatpush3.bf16.msra.mxu0 %v257_v58  ;;  %872 = vmatpush3.bf16.msra.mxu1 %v257_v58 }
  0xf7   :  { %838 = vmatprep.subr.bf16.mxu0 %v256_v59  ;;  %865 = vmatprep.subr.bf16.mxu1 %v256_v59 }
  0xfa   :  { %839 = vmatpush3.bf16.msra.mxu0 %v256_v59  ;;  %873 = vmatpush3.bf16.msra.mxu1 %v256_v59 }
  0xfb   :  { %840 = vmatprep.subr.bf16.mxu0 %v255_v60  ;;  %866 = vmatprep.subr.bf16.mxu1 %v255_v60 }
  0xfe   :  { %841 = vmatpush3.bf16.msra.mxu0 %v255_v60  ;;  %874 = vmatpush3.bf16.msra.mxu1 %v255_v60 }
  0xff   :  { %842 = vmatprep.subr.bf16.mxu0 %v254_v62  ;;  %867 = vmatprep.subr.bf16.mxu1 %v254_v62 }
 0x102   :  { %843 = vmatpush3.bf16.msra.mxu0 %v254_v62  ;;  %875 = vmatpush3.bf16.msra.mxu1 %v254_v62 }
 0x105   :  { %845 = vmatmul.mubr.bf16.vlgmr.msra.gmra.mxu0 %v1009_v19  ;;  %849 = vmatmul.mubr.bf16.vlgmr.msra.gmra.mxu1 %v321_v61 }
 0x106   :  { %852 = vmatprep.mubr.bf16.mxu1 %v322_v63 }
 0x10d   :  { %853 = vmatmul.mubr.bf16.gmra.mxu1 %v323_v0 }
 0x10e   :  { %856 = vmatprep.mubr.bf16.mxu1 %v324_v1 }
 0x115   :  { %857 = vmatmul.mubr.bf16.gmra.mxu1 %v325_v2 }
 0x1c5   :  { %v846_v12 = vpop.f32.mrf.mxu0  ;;  %v850_v13 = vpop.f32.mrf.mxu1 }
 0x1c6   :  { %v572_v19 = vmul.f32 %v846_v12, %v503_v5  ;;  %v576_v20 = vmul.f32 %v850_v13, %v523_v9 }
 0x1c7   :  { %v360_v15 = vpop.f32.mrf.mxu0  ;;  %v376_v16 = vpop.f32.mrf.mxu1 }
 0x1c8   :  { %v570_v23 = vmul.f32 %v493_v3, %v360_v15  ;;  %v574_v24 = vmul.f32 %v513_v7, %v376_v16 }
 0x1c9   :  { %v847_v17 = vpop.f32.mrf.mxu0  ;;  %v851_v18 = vpop.f32.mrf.mxu1 }
 0x1ca   :  { %v573_v21 = vmul.f32 %v847_v17, %v508_v6  ;;  %v577_v22 = vmul.f32 %v851_v18, %v528_v10 }
 0x1cb   :  { %v363_v25 = vpop.f32.mrf.mxu0  ;;  %v379_v26 = vpop.f32.mrf.mxu1 }
 0x1cc   :  { %v746_v28 = vpack.c.bf16 %v573_v21, %v572_v19  ;;  %v756_v29 = vpack.c.bf16 %v577_v22, %v576_v20  ;;  %v571_v30 = vmul.f32 %v498_v4, %v363_v25  ;;  %v575_v31 = vmul.f32 %v518_v8, %v379_v26 }
 0x1cd   :  { %v854_v33 = vpop.f32.mrf.mxu1 }
 0x1ce   :  { %778 = vst [vmem:[#allocation3 + $0x8] sm:$0xff] %v746_v28   ;;  %780 = vst [vmem:[#allocation3 + $0x18] sm:$0xff] %v756_v29   ;;  %v741_v34 = vpack.c.bf16 %v571_v30, %v570_v23  ;;  %v751_v35 = vpack.c.bf16 %v575_v31, %v574_v24  ;;  %v580_v39 = vmul.f32 %v854_v33, %v543_v14 }
 0x1cf   :  { %v392_v36 = vpop.f32.mrf.mxu1 }
 0x1d0   :  { %742 = vst [vmem:[#allocation3] sm:$0xff] %v741_v34   ;;  %779 = vst [vmem:[#allocation3 + $0x10] sm:$0xff] %v751_v35   ;;  %v578_v43 = vmul.f32 %v533_v32, %v392_v36 }
 0x1d1   :  { %v855_v37 = vpop.f32.mrf.mxu1 }
 0x1d2   :  { %v581_v40 = vmul.f32 %v855_v37, %v548_v27 }
 0x1d3   :  { %v395_v42 = vpop.f32.mrf.mxu1 }
 0x1d4   :  { %v766_v44 = vpack.c.bf16 %v581_v40, %v580_v39  ;;  %v579_v45 = vmul.f32 %v538_v11, %v395_v42 }
 0x1d5   :  { %v858_v46 = vpop.f32.mrf.mxu1 }
 0x1d6   :  { %782 = vst [vmem:[#allocation3 + $0x28] sm:$0xff] %v766_v44   ;;  %v761_v47 = vpack.c.bf16 %v579_v45, %v578_v43  ;;  %v584_v52 = vmul.f32 %v858_v46, %v563_v50 }
 0x1d7   :  { %v408_v48 = vpop.f32.mrf.mxu1 }
 0x1d8   :  { %781 = vst [vmem:[#allocation3 + $0x20] sm:$0xff] %v761_v47   ;;  %v582_v55 = vmul.f32 %v553_v41, %v408_v48 }
 0x1d9   :  { %v859_v51 = vpop.f32.mrf.mxu1 }
 0x1da   :  { %v585_v53 = vmul.f32 %v859_v51, %v568_v49 }
 0x1db   :  { %v411_v54 = vpop.f32.mrf.mxu1 }
 0x1dc   :  { %v776_v56 = vpack.c.bf16 %v585_v53, %v584_v52  ;;  %v583_v57 = vmul.f32 %v558_v38, %v411_v54 }
 0x1de   :  { %784 = vst [vmem:[#allocation3 + $0x38] sm:$0xff] %v776_v56   ;;  %v771_v58 = vpack.c.bf16 %v583_v57, %v582_v55 }
 0x1e0   :  { %783 = vst [vmem:[#allocation3 + $0x30] sm:$0xff] %v771_v58  }
 0x1e1   :  { %910 = shalt.err (!%p907_p4)
}
 0x1e2   :  { %s923_s24 = smov 64   ;;  %s924_s25 = smov 4  }
 0x1e3   :  { %677 = dma.vmem_to_hbm [thread:$0]  %s672_s23, 1024, %s1067_s4, [#allocation4], %s923_s24, %s923_s24, %s924_s25  }
 0x1e4   :  { %919 = dma.done.wait [#allocation4], 1024  }
 0x1e5   :  { %920 = vsyncadd [#allocation4], 4294966272 }
 0x1e6   :  { %681 = vsyncpa [#allocation4], 1 }

</bundles_post_ra>
